<compile_context>
chip_gen: v6e
topology: v6e:2x2x1
jax: 0.10.0
libtpu: 0.0.40
codegen_flags: <defaults>
</compile_context>

<pallas_src>
import functools
import math

import numpy as np
import jax
import jax.numpy as jnp
from jax import lax
from jax.experimental import pallas as pl
from jax.experimental.pallas import tpu as pltpu


def _round_up(x: int, m: int) -> int:
    return ((x + m - 1) // m) * m


def _cdiv(a: int, b: int) -> int:
    return -(-a // b)


# Budget for (resident weights + pipelined row tiles): fits comfortably inside
# v7x's 32 MiB scoped-VMEM default (64 MiB physical); v5e/v6e have more.
_VMEM_BUDGET = 24 << 20


def _const_spec(shape):
    """BlockSpec for an operand whose block index never changes across the grid.
    pl.Buffered(1) drops the (useless) second pipeline buffer, halving its VMEM
    footprint.  Falls back to the default double-buffered spec on older jax."""
    idx = lambda *_: (0,) * len(shape)
    try:
        return pl.BlockSpec(shape, idx, pipeline_mode=pl.Buffered(1))
    except TypeError:  # pipeline_mode kwarg unavailable
        return pl.BlockSpec(shape, idx)


def _finalize_store(y, x_f32, gamma, beta, o_ref, seed_ref, *,
                    dropout_p, apply_dropout, eps):
    """dropout (train only) -> residual -> LayerNorm -> store.  y/x_f32: (TM, D) f32."""
    if apply_dropout:
        pltpu.prng_seed(seed_ref[0] + pl.program_id(0))
        bits = pltpu.bitcast(pltpu.prng_random_bits(y.shape), jnp.uint32)
        thr = jnp.uint32(min(int(round(dropout_p * (2.0 ** 32))), 2 ** 32 - 1))
        keep = bits >= thr                                   # P(keep) = 1 - p
        y = jnp.where(keep, y * jnp.float32(1.0 / (1.0 - dropout_p)), jnp.float32(0.0))

    y = y + x_f32                                            # residual add

    # LayerNorm over d_model: independent sum / sum-of-squares reductions so the
    # two XLU reductions can overlap (no mean -> center -> var serial chain).
    inv_d = jnp.float32(1.0 / y.shape[-1])
    mean = jnp.sum(y, axis=-1, keepdims=True) * inv_d
    var = jnp.sum(y * y, axis=-1, keepdims=True) * inv_d - mean * mean
    inv = lax.rsqrt(var + jnp.float32(eps))                  # EUP slot, ~free
    o_ref[...] = ((y - mean) * (inv * gamma) + beta).astype(o_ref.dtype)


def _ffn_resident_kernel(*refs, dropout_p, apply_dropout, eps):
    """Fast path: W1/W2 fully resident in VMEM, single grid axis over row tiles."""
    if apply_dropout:
        seed_ref, refs = refs[0], refs[1:]
    else:
        seed_ref = None
    x_ref, w1_ref, b1_ref, w2_ref, b2_ref, g_ref, bt_ref, o_ref = refs

    x = x_ref[...]                                           # MXU-native dtype (bf16/f32)
    h = jnp.dot(x, w1_ref[...], preferred_element_type=jnp.float32) + b1_ref[...]
    h = jnp.maximum(h, 0.0).astype(x.dtype)                  # back to narrow dtype for GEMM 2
    y = jnp.dot(h, w2_ref[...], preferred_element_type=jnp.float32) + b2_ref[...]
    _finalize_store(y, x.astype(jnp.float32), g_ref[...], bt_ref[...], o_ref, seed_ref,
                    dropout_p=dropout_p, apply_dropout=apply_dropout, eps=eps)


def _ffn_htiled_kernel(*refs, dropout_p, apply_dropout, eps):
    """Fallback: hidden dim tiled on an "arbitrary" grid axis with a (TM, D) f32
    accumulator.  Used when 2*D*H weights do not fit the VMEM budget."""
    if apply_dropout:
        seed_ref, refs = refs[0], refs[1:]
    else:
        seed_ref = None
    x_ref, w1_ref, b1_ref, w2_ref, b2_ref, g_ref, bt_ref, o_ref, acc_ref = refs

    j = pl.program_id(1)
    x = x_ref[...]
    h = jnp.dot(x, w1_ref[...], preferred_element_type=jnp.float32) + b1_ref[...]
    h = jnp.maximum(h, 0.0).astype(x.dtype)                  # ReLU per H-slice is exact
    part = jnp.dot(h, w2_ref[...], preferred_element_type=jnp.float32)

    @pl.when(j == 0)
    def _():
        acc_ref[...] = part

    @pl.when(j != 0)
    def _():
        acc_ref[...] += part

    @pl.when(j == pl.num_programs(1) - 1)
    def _():
        _finalize_store(acc_ref[...] + b2_ref[...], x.astype(jnp.float32),
                        g_ref[...], bt_ref[...], o_ref, seed_ref,
                        dropout_p=dropout_p, apply_dropout=apply_dropout, eps=eps)


def position_wise_feed_forward(x, w1, b1, w2, b2, gamma, beta, *,
                               dropout_p: float = 0.5, training: bool = False,
                               seed: int = 0, eps: float = 1e-5,
                               force_hidden_tile=None):
    """x: (B, L, D); w1: (D, H); b1: (H,); w2: (H, D); b2/gamma/beta: (D,).

    Matmuls run in x.dtype (pass bf16 for MXU-native throughput); bias, dropout,
    residual and LayerNorm run in f32.  Output dtype == x.dtype.
    """
    B, L, D = x.shape
    H = w1.shape[1]
    assert w1.shape == (D, H) and w2.shape == (H, D)
    assert b1.shape == (H,) and b2.shape == (D,)
    assert gamma.shape == (D,) and beta.shape == (D,)

    cdt = x.dtype
    in_bytes = jnp.dtype(cdt).itemsize

    w1c = w1.astype(cdt)                            # MXU operands in the narrow dtype
    w2c = w2.astype(cdt)
    b1f = b1.astype(jnp.float32).reshape(1, H)      # small params stay f32
    b2f = b2.astype(jnp.float32).reshape(1, D)
    gf = gamma.astype(jnp.float32).reshape(1, D)
    btf = beta.astype(jnp.float32).reshape(1, D)

    rows = B * L
    x2 = x.reshape(rows, D)

    # ---- hidden-dim strategy: fully-resident weights vs. H-tiled accumulation ----
    w_res_bytes = 2 * D * H * in_bytes + (H + 3 * D) * 4
    resident = force_hidden_tile is None and w_res_bytes <= _VMEM_BUDGET // 2
    if resident:
        TH, H_p, h_tiles = H, H, 1
    else:
        cap = (_round_up(int(force_hidden_tile), 128) if force_hidden_tile is not None
               else max(128, ((_VMEM_BUDGET // 2) // (4 * D * in_bytes)) // 128 * 128))
        cap = min(cap, _round_up(H, 128))
        h_tiles = _cdiv(H, cap)
        TH = _round_up(_cdiv(H, h_tiles), 128)
        H_p = TH * h_tiles
        if H_p != H:                                # zero-pad hidden: mathematically a no-op
            w1c = jnp.pad(w1c, ((0, 0), (0, H_p - H)))
            w2c = jnp.pad(w2c, ((0, H_p - H), (0, 0)))
            b1f = jnp.pad(b1f, ((0, 0), (0, H_p - H)))

    # ---- row tile: as large as VMEM allows; >=2 grid steps so both v7x TCs work ----
    sub = 16 if in_bytes < 4 else 8                 # packed sublanes for narrow dtypes
    rows_al = _round_up(rows, sub)
    per_row = 2 * (2 * D * in_bytes) + TH * 4 + 2 * D * 4    # x/out tiles (2-buf) + temps
    TM = min(1024, max(sub, ((_VMEM_BUDGET // 2) // per_row) // sub * sub), rows_al)
    if TM >= rows_al and rows_al >= 2 * sub:
        TM = _round_up(_cdiv(rows_al, 2), sub)      # split rows across the 2 TensorCores
    rows_p = _round_up(rows, TM)
    if rows_p != rows:
        x2 = jnp.pad(x2, ((0, rows_p - rows), (0, 0)))
    row_tiles = rows_p // TM

    apply_dropout = bool(training) and float(dropout_p) > 0.0
    num_prefetch = 1 if apply_dropout else 0        # seed only prefetched in training

    if resident:
        grid = (row_tiles,)
        dims = ("parallel",)
        x_spec = pl.BlockSpec((TM, D), lambda i, *_: (i, 0))
        out_spec = pl.BlockSpec((TM, D), lambda i, *_: (i, 0))
        w_specs = [_const_spec((D, H_p)), _const_spec((1, H_p)),
                   _const_spec((H_p, D)), _const_spec((1, D)),
                   _const_spec((1, D)), _const_spec((1, D))]
        kernel = functools.partial(_ffn_resident_kernel, dropout_p=float(dropout_p),
                                   apply_dropout=apply_dropout, eps=float(eps))
        scratch = []
    else:
        grid = (row_tiles, h_tiles)
        dims = ("parallel", "arbitrary")            # reduction (hidden) axis last
        x_spec = pl.BlockSpec((TM, D), lambda i, j, *_: (i, 0))
        out_spec = pl.BlockSpec((TM, D), lambda i, j, *_: (i, 0))
        w_specs = [pl.BlockSpec((D, TH), lambda i, j, *_: (0, j)),
                   pl.BlockSpec((1, TH), lambda i, j, *_: (0, j)),
                   pl.BlockSpec((TH, D), lambda i, j, *_: (j, 0)),
                   _const_spec((1, D)), _const_spec((1, D)), _const_spec((1, D))]
        kernel = functools.partial(_ffn_htiled_kernel, dropout_p=float(dropout_p),
                                   apply_dropout=apply_dropout, eps=float(eps))
        scratch = [pltpu.VMEM((TM, D), jnp.float32)]

    # VMEM limit from the actual footprint + advisory cost estimate for XLA.
    weights_live = 2 * D * (H_p if resident else 2 * TH) * in_bytes + (H_p + 3 * D) * 4
    tiles_live = 2 * (2 * TM * D * in_bytes)
    temps_live = TM * TH * 4 + 3 * TM * D * 4
    vmem_limit = int(min(60 << 20, max(32 << 20,
                                       2 * (weights_live + tiles_live + temps_live))))
    cost = pl.CostEstimate(
        flops=4 * rows_p * D * H_p,
        transcendentals=rows_p,
        bytes_accessed=2 * rows_p * D * in_bytes + 2 * D * H_p * in_bytes
                       + (H_p + 3 * D) * 4)

    args = ([jnp.array([seed], dtype=jnp.int32)] if apply_dropout else []) \
           + [x2, w1c, b1f, w2c, b2f, gf, btf]

    out2 = pl.pallas_call(
        kernel,
        out_shape=jax.ShapeDtypeStruct((rows_p, D), x.dtype),
        grid_spec=pltpu.PrefetchScalarGridSpec(
            num_scalar_prefetch=num_prefetch,
            grid=grid,
            in_specs=[x_spec] + w_specs,
            out_specs=out_spec,
            scratch_shapes=scratch),
        compiler_params=pltpu.CompilerParams(
            dimension_semantics=dims, vmem_limit_bytes=vmem_limit),
        cost_estimate=cost,
    )(*args)

    # TODO(synk): with d_model=32 the output/elementwise tail uses 32 of 128 lanes;
    # a lane-dense repack (or padding d_model to 128 with masked LN stats) would
    # further speed the store-bound tail but changes the surrounding layout.
    return out2[:rows].reshape(B, L, D)


def _reference(x, w1, b1, w2, b2, gamma, beta, eps=1e-5):
    h = jnp.maximum(x @ w1 + b1, 0.0)
    y = h @ w2 + b2
    y = y + x                                       # eval mode: dropout is identity
    mean = y.mean(-1, keepdims=True)
    var = ((y - mean) ** 2).mean(-1, keepdims=True)
    return (y - mean) / jnp.sqrt(var + eps) * gamma + beta


if __name__ == "__main__":
    # Small shapes consistent with the module: batch=2, word_pad_len=8,
    # d_model=32, hidden_size=64.
    B, L, D, H = 2, 8, 32, 64

    key = jax.random.PRNGKey(0)
    kx, k1, k2, k3, k4, k5, k6, k7 = jax.random.split(key, 8)

    x = jax.random.normal(kx, (B, L, D), dtype=jnp.float32)
    # nn.Linear-style init (transposed layout: W1 is (D, H), W2 is (H, D)).
    lim1, lim2 = 1.0 / math.sqrt(D), 1.0 / math.sqrt(H)
    w1 = jax.random.uniform(k1, (D, H), jnp.float32, -lim1, lim1)
    b1 = jax.random.uniform(k2, (H,), jnp.float32, -lim1, lim1)
    w2 = jax.random.uniform(k3, (H, D), jnp.float32, -lim2, lim2)
    b2 = jax.random.uniform(k4, (D,), jnp.float32, -lim2, lim2)
    gamma = jnp.ones((D,), jnp.float32)
    beta = jnp.zeros((D,), jnp.float32)

    ref = _reference(x, w1, b1, w2, b2, gamma, beta)

    # 1) eval mode, f32, weights-resident fast path (matches module.eval()).
    out = jax.block_until_ready(position_wise_feed_forward(
        x, w1, b1, w2, b2, gamma, beta, dropout_p=0.5, training=False))
    np.testing.assert_allclose(np.asarray(out), np.asarray(ref), rtol=1e-4, atol=1e-4)

    # 2) bf16 activations + weights (MXU-native dtype), f32 accumulation.
    out_bf = jax.block_until_ready(position_wise_feed_forward(
        x.astype(jnp.bfloat16), w1, b1, w2, b2, gamma, beta, training=False))
    np.testing.assert_allclose(np.asarray(out_bf.astype(jnp.float32)),
                               np.asarray(ref), rtol=5e-2, atol=5e-2)

    # 3) hidden-tiled fallback path (f32 accumulator over the H grid axis),
    #    forced at a small padded hidden size so both paths are exercised.
    H2 = 256
    lim2b = 1.0 / math.sqrt(H2)
    w1b = jax.random.uniform(k5, (D, H2), jnp.float32, -lim1, lim1)
    b1b = jax.random.uniform(k6, (H2,), jnp.float32, -lim1, lim1)
    w2b = jax.random.uniform(k7, (H2, D), jnp.float32, -lim2b, lim2b)
    refb = _reference(x, w1b, b1b, w2b, b2, gamma, beta)
    outb = jax.block_until_ready(position_wise_feed_forward(
        x, w1b, b1b, w2b, b2, gamma, beta, training=False, force_hidden_tile=128))
    np.testing.assert_allclose(np.asarray(outb), np.asarray(refb), rtol=1e-4, atol=1e-4)

    # TODO(synk): training-mode dropout (in-kernel HW PRNG, inverted 1/(1-p)
    # scaling) is implemented but not numerically asserted here, since the
    # random mask has no bitwise torch-compatible reference; eval-mode
    # semantics are fully verified above.

    print("KERNEL_OK")
</pallas_src>

<mosaic_0001>
module attributes {stable_mosaic.version = 11 : i64} {
  func.func @_ffn_resident_kernel(%arg0: i32, %arg1: memref<8x32xf32, #tpu.memory_space<vmem>>, %arg2: memref<32x64xf32, #tpu.memory_space<vmem>>, %arg3: memref<1x64xf32, #tpu.memory_space<vmem>>, %arg4: memref<64x32xf32, #tpu.memory_space<vmem>>, %arg5: memref<1x32xf32, #tpu.memory_space<vmem>>, %arg6: memref<1x32xf32, #tpu.memory_space<vmem>>, %arg7: memref<1x32xf32, #tpu.memory_space<vmem>>, %arg8: memref<8x32xf32, #tpu.memory_space<vmem>>) attributes {dimension_semantics = [#tpu.dimension_semantics<parallel>], iteration_bounds = array<i64: 2>, scalar_prefetch = 0 : i64, scratch_operands = 0 : i64, tpu.core_type = #tpu.core_type<tc>, window_params = [{transform_indices = @transform_0, window_bounds = array<i64: 8, 32>}, {pipeline_mode = #tpu.pipeline_mode<synchronous>, transform_indices = @transform_1, window_bounds = array<i64: 32, 64>}, {pipeline_mode = #tpu.pipeline_mode<synchronous>, transform_indices = @transform_2, window_bounds = array<i64: 1, 64>}, {pipeline_mode = #tpu.pipeline_mode<synchronous>, transform_indices = @transform_3, window_bounds = array<i64: 64, 32>}, {pipeline_mode = #tpu.pipeline_mode<synchronous>, transform_indices = @transform_4, window_bounds = array<i64: 1, 32>}, {pipeline_mode = #tpu.pipeline_mode<synchronous>, transform_indices = @transform_5, window_bounds = array<i64: 1, 32>}, {pipeline_mode = #tpu.pipeline_mode<synchronous>, transform_indices = @transform_6, window_bounds = array<i64: 1, 32>}, {transform_indices = @transform_7, window_bounds = array<i64: 8, 32>}]} {
    %c0 = arith.constant 0 : index
    %c0_0 = arith.constant 0 : index
    %0 = vector.load %arg1[%c0, %c0_0] : memref<8x32xf32, #tpu.memory_space<vmem>>, vector<8x32xf32>
    %c0_1 = arith.constant 0 : index
    %c0_2 = arith.constant 0 : index
    %1 = vector.load %arg2[%c0_1, %c0_2] : memref<32x64xf32, #tpu.memory_space<vmem>>, vector<32x64xf32>
    %cst = arith.constant dense<0.000000e+00> : vector<8x64xf32>
    %2 = tpu.matmul %0, %1, %cst {dimension_numbers = #tpu.dot_dimension_numbers<[1], [0], [0], [1], [0, 0, 1, 1], [], []>} : vector<8x32xf32>, vector<32x64xf32>, vector<8x64xf32> -> vector<8x64xf32>
    %c0_3 = arith.constant 0 : index
    %c0_4 = arith.constant 0 : index
    %3 = vector.load %arg3[%c0_3, %c0_4] : memref<1x64xf32, #tpu.memory_space<vmem>>, vector<1x64xf32>
    %4 = vector.broadcast %3 : vector<1x64xf32> to vector<8x64xf32>
    %5 = arith.addf %2, %4 : vector<8x64xf32>
    %cst_5 = arith.constant 0.000000e+00 : f32
    %6 = vector.broadcast %cst_5 : f32 to vector<8x64xf32>
    %7 = arith.maximumf %5, %6 : vector<8x64xf32>
    %c0_6 = arith.constant 0 : index
    %c0_7 = arith.constant 0 : index
    %8 = vector.load %arg4[%c0_6, %c0_7] : memref<64x32xf32, #tpu.memory_space<vmem>>, vector<64x32xf32>
    %cst_8 = arith.constant dense<0.000000e+00> : vector<8x32xf32>
    %9 = tpu.matmul %7, %8, %cst_8 {dimension_numbers = #tpu.dot_dimension_numbers<[1], [0], [0], [1], [0, 0, 1, 1], [], []>} : vector<8x64xf32>, vector<64x32xf32>, vector<8x32xf32> -> vector<8x32xf32>
    %c0_9 = arith.constant 0 : index
    %c0_10 = arith.constant 0 : index
    %10 = vector.load %arg5[%c0_9, %c0_10] : memref<1x32xf32, #tpu.memory_space<vmem>>, vector<1x32xf32>
    %11 = vector.broadcast %10 : vector<1x32xf32> to vector<8x32xf32>
    %12 = arith.addf %9, %11 : vector<8x32xf32>
    %c0_11 = arith.constant 0 : index
    %c0_12 = arith.constant 0 : index
    %13 = vector.load %arg6[%c0_11, %c0_12] : memref<1x32xf32, #tpu.memory_space<vmem>>, vector<1x32xf32>
    %c0_13 = arith.constant 0 : index
    %c0_14 = arith.constant 0 : index
    %14 = vector.load %arg7[%c0_13, %c0_14] : memref<1x32xf32, #tpu.memory_space<vmem>>, vector<1x32xf32>
    %15 = arith.addf %12, %0 : vector<8x32xf32>
    %cst_15 = arith.constant dense<0.000000e+00> : vector<8xf32>
    %16 = vector.multi_reduction <add>, %15, %cst_15 [1] : vector<8x32xf32> to vector<8xf32>
    %17 = vector.shape_cast %16 : vector<8xf32> to vector<8x1xf32>
    %cst_16 = arith.constant 3.125000e-02 : f32
    %18 = vector.broadcast %cst_16 : f32 to vector<8x1xf32>
    %19 = arith.mulf %17, %18 : vector<8x1xf32>
    %20 = arith.mulf %15, %15 : vector<8x32xf32>
    %cst_17 = arith.constant dense<0.000000e+00> : vector<8xf32>
    %21 = vector.multi_reduction <add>, %20, %cst_17 [1] : vector<8x32xf32> to vector<8xf32>
    %22 = vector.shape_cast %21 : vector<8xf32> to vector<8x1xf32>
    %cst_18 = arith.constant 3.125000e-02 : f32
    %23 = vector.broadcast %cst_18 : f32 to vector<8x1xf32>
    %24 = arith.mulf %22, %23 : vector<8x1xf32>
    %25 = arith.mulf %19, %19 : vector<8x1xf32>
    %26 = arith.subf %24, %25 : vector<8x1xf32>
    %cst_19 = arith.constant 9.99999974E-6 : f32
    %27 = vector.broadcast %cst_19 : f32 to vector<8x1xf32>
    %28 = arith.addf %26, %27 : vector<8x1xf32>
    %29 = math.rsqrt %28 : vector<8x1xf32>
    %30 = vector.broadcast %19 : vector<8x1xf32> to vector<8x32xf32>
    %31 = arith.subf %15, %30 : vector<8x32xf32>
    %32 = vector.broadcast %29 : vector<8x1xf32> to vector<8x32xf32>
    %33 = vector.broadcast %13 : vector<1x32xf32> to vector<8x32xf32>
    %34 = arith.mulf %32, %33 : vector<8x32xf32>
    %35 = arith.mulf %31, %34 : vector<8x32xf32>
    %36 = vector.broadcast %14 : vector<1x32xf32> to vector<8x32xf32>
    %37 = arith.addf %35, %36 : vector<8x32xf32>
    %c0_20 = arith.constant 0 : index
    %c0_21 = arith.constant 0 : index
    %38 = vector.load %arg8[%c0_20, %c0_21] : memref<8x32xf32, #tpu.memory_space<vmem>>, vector<8x32xf32>
    tpu.vector_store %arg8[%c0_20, %c0_21], %37 {strides = array<i32>} : memref<8x32xf32, #tpu.memory_space<vmem>>, vector<8x32xf32>,
    return
  }
  func.func @transform_0(%arg0: i32) -> (i32, i32) {
    %c0_i32 = arith.constant 0 : i32
    %c0_i32_0 = arith.constant 0 : i32
    return %arg0, %c0_i32 : i32, i32
  }
  func.func @transform_1(%arg0: i32) -> (i32, i32) {
    %c0_i32 = arith.constant 0 : i32
    %c0_i32_0 = arith.constant 0 : i32
    %c0_i32_1 = arith.constant 0 : i32
    return %c0_i32, %c0_i32_0 : i32, i32
  }
  func.func @transform_2(%arg0: i32) -> (i32, i32) {
    %c0_i32 = arith.constant 0 : i32
    %c0_i32_0 = arith.constant 0 : i32
    %c0_i32_1 = arith.constant 0 : i32
    return %c0_i32, %c0_i32_0 : i32, i32
  }
  func.func @transform_3(%arg0: i32) -> (i32, i32) {
    %c0_i32 = arith.constant 0 : i32
    %c0_i32_0 = arith.constant 0 : i32
    %c0_i32_1 = arith.constant 0 : i32
    return %c0_i32, %c0_i32_0 : i32, i32
  }
  func.func @transform_4(%arg0: i32) -> (i32, i32) {
    %c0_i32 = arith.constant 0 : i32
    %c0_i32_0 = arith.constant 0 : i32
    %c0_i32_1 = arith.constant 0 : i32
    return %c0_i32, %c0_i32_0 : i32, i32
  }
  func.func @transform_5(%arg0: i32) -> (i32, i32) {
    %c0_i32 = arith.constant 0 : i32
    %c0_i32_0 = arith.constant 0 : i32
    %c0_i32_1 = arith.constant 0 : i32
    return %c0_i32, %c0_i32_0 : i32, i32
  }
  func.func @transform_6(%arg0: i32) -> (i32, i32) {
    %c0_i32 = arith.constant 0 : i32
    %c0_i32_0 = arith.constant 0 : i32
    %c0_i32_1 = arith.constant 0 : i32
    return %c0_i32, %c0_i32_0 : i32, i32
  }
  func.func @transform_7(%arg0: i32) -> (i32, i32) {
    %c0_i32 = arith.constant 0 : i32
    %c0_i32_0 = arith.constant 0 : i32
    return %arg0, %c0_i32 : i32, i32
  }
}

</mosaic_0001>

<bundles_post_ra>
// kernel: tpu_custom_call.1
= control target key start
LH: loop header
LB: loop body
LE: loop exit
PB: predicated region body
PF: predicated region fallthrough
CT: control target
= control target key end

     0   :  { %12 = vsyncpa [#allocation3], 0  ;;  %s905_s0 = inlined_call_operand.vmem [shape: f32[16,32], index: 0, kind: input, shape index: {}]   ;;  %s906_s1 = inlined_call_operand.vmem [shape: f32[32,64], index: 1, kind: input, shape index: {}]   ;;  %s907_s2 = inlined_call_operand.vmem [shape: f32[1,64], index: 2, kind: input, shape index: {}]   ;;  %s908_s3 = inlined_call_operand.vmem [shape: f32[64,32], index: 3, kind: input, shape index: {}]   ;;  %s909_s4 = inlined_call_operand.vmem [shape: f32[1,32], index: 4, kind: input, shape index: {}]   ;;  %s910_s5 = inlined_call_operand.vmem [shape: f32[1,32], index: 5, kind: input, shape index: {}]   ;;  %s911_s6 = inlined_call_operand.vmem [shape: f32[1,32], index: 6, kind: input, shape index: {}]   ;;  %s912_s7 = inlined_call_operand.hbm [shape: f32[16,32], index: 7, kind: output, shape index: {}]  }
   0x1   :  { %14 = vsyncpa [#allocation3 + $0x1], 0  ;;  %s764_s24 = smov 0   ;;  %s766_s25 = smov 0  }
   0x2   :  { %s768_s26 = smov 0   ;;  %s770_s27 = smov 0  }
   0x3 LB: > { %s785_s28 = sadd.s32 4294967295, %s719_s27   ;;  %s556_s29 = sadd.s32 4294967294, %s719_s27   ;;  %s719_s27 = sphi %s770_s27, %s918_s27   ;;  %s715_s26 = sphi %s768_s26, %s917_s26   ;;  %s711_s25 = sphi %s766_s25, %s916_s25   ;;  %s707_s24 = sphi %s764_s24, %s915_s24  }
   0x4   : > { %s789_s30 = sadd.s32 1, %s719_s27   ;;  %s179_s8 = sadd.s32 1, %s715_s26 }
   0x5   : > { %s176_s9 = ssub.s32 %s719_s27, %s789_s30  ;;  %p189_p0 = scmp.ne.s32.totalorder %s715_s26, %s711_s25 }
   0x6   : > { %p177_p1 = scmp.eq.s32.totalorder %s176_s9, 0  ;;  %p190_p2 = scmp.eq.s32.totalorder %s785_s28, 1 }
   0x7   : > { %p195_p3 = scmp.ne.s32.totalorder %s711_s25, %s707_s24  ;;  %p196_p4 = scmp.eq.s32.totalorder %s556_s29, 1 }
   0x8   : > { %s800_s10 = scalar_select %p177_p1, %s715_s26, %s179_s8  }
   0x9   : > { %p802_p5 = por %p190_p2, %p189_p0  ;;  %p806_p6 = por %p196_p4, %p195_p3 }
   0xa   : > { %p559_p7 = scmp.ge.s32.totalorder %s719_s27, 1  ;;  %p239_p8 = scmp.lt.s32.totalorder %s719_s27, 3 }
   0xc   : > { %p240_p9 = pnand %p559_p7, %p239_p8 }
   0xd   : > { %p270_p10 = scmp.lt.s32.totalorder (!%p240_p9), %s785_s28, 1  ;;  %s267_s18 = sand.u32 (!%p240_p9), 1, %s711_s25  }
   0xe   : > { %243 = sbr.rel (%p240_p9) target bundleno = 604 (0x25c), region = 48  ;;  %s484_s16 = scalar_lea.sflag (!%p240_p9), [#allocation3], %s267_s18 }
   0xf   : > { %s723_s20 = smov (!%p240_p9), [#allocation2]  }
  0x10   : > { %s663_s21 = sshll.u32 (!%p240_p9), %s723_s20, 4  ;;  %s664_s21 = int_to_ptr.vmem [resolvable:$false] %s663_s21 }
  0x13   : > { %v278_v0 = vld [vmem:[%s906_s1 + $0x18] sm:$0xff]  ;;  %v721_v1 = vmov 0.0   ;;  %v277_v2 = vld [vmem:[%s906_s1 + $0x10] sm:$0xff]  ;;  %vm722_vm0 = vmmov 0   ;;  %s271_s19 = scalar_select %p270_p10, %s785_s28, 1  ;;  %v276_v5 = vld [vmem:[%s906_s1 + $0x8] sm:$0xff] }
  0x14   : > { %586 = vmatprep.subr.mxu0 %v721_v1  ;;  %594 = vmatprep.mubr.msk.f32.mxu0 %vm722_vm0, %v721_v1  ;;  %v368_v3 = vld [vmem:[%s908_s3 + $0x38] sm:$0xff]  ;;  %v367_v4 = vld [vmem:[%s908_s3 + $0x30] sm:$0xff]  ;;  %v366_v6 = vld [vmem:[%s908_s3 + $0x28] sm:$0xff]  ;;  %vm286_vm1 = vcmask 261120   ;;  %vm376_vm2 = vcmask 523264  }
  0x15   : > { %587 = vmatpush3.msra.mxu0 %v278_v0  ;;  %597 = vmatprep.subr.mxu1 %v721_v1  ;;  %s561_s29 = sshll.u32 %s271_s19, 3  ;;  %v275_v7 = vld [vmem:[%s906_s1] sm:$0xff]  ;;  %v364_v10 = vld [vmem:[%s908_s3 + $0x18] sm:$0xff]  ;;  %v363_v11 = vld [vmem:[%s908_s3 + $0x10] sm:$0xff]  ;;  %s560_s19 = sshll.u32 %s267_s18, 3 }
  0x16   : > { %588 = vmatprep.subr.mxu0 %v721_v1  ;;  %598 = vmatpush3.msra.mxu1 %v368_v3  ;;  %s273_s17 = scalar_lea.vmem %s905_s0, %s561_s29  ;;  %v365_v9 = vld [vmem:[%s908_s3 + $0x20] sm:$0xff]  ;;  %v362_v12 = vld [vmem:[%s908_s3 + $0x8] sm:$0xff]  ;;  %s569_s29 = sshll.u32 %s785_s28, 7 }
  0x17   : > { %589 = vmatpush3.msra.mxu0 %v277_v2  ;;  %599 = vmatprep.subr.mxu1 %v721_v1  ;;  %v274_v8 = vld [vmem:[%s273_s17] sm:$0xff]  ;;  %s269_s8 = scalar_lea.vmem [#allocation2], %s560_s19  ;;  %s495_s15 = scalar_lea.hbm %s912_s7, %s569_s29 }
  0x18   : > { %590 = vmatprep.subr.mxu0 %v721_v1  ;;  %600 = vmatpush3.msra.mxu1 %v367_v4  ;;  %v361_v13 = vld [vmem:[%s908_s3] sm:$0xff]  ;;  %s497_s9 = sshll.u32 %s269_s8, 4  ;;  %s665_s28 = scalar_lea.vmem %s664_s21, 256  ;;  %s498_s9 = int_to_ptr.vmem [resolvable:$true] %s497_s9 }
  0x19   : > { %591 = vmatpush3.msra.mxu0 %v276_v5  ;;  %601 = vmatprep.subr.mxu1 %v721_v1  ;;  %v562_v14 = vld [vmem:[%s907_s2] ss:$0 sm:$0xff]  ;;  %s659_s17 = scalar_lea.vmem %s498_s9, 128  ;;  %p666_p0 = scmp.lt.s32.totalorder %s498_s9, %s664_s21 }
  0x1a   : > { %592 = vmatprep.subr.mxu0 %v721_v1  ;;  %602 = vmatpush3.msra.mxu1 %v366_v6  ;;  %v564_v19 = vld [vmem:[%s909_s4] ss:$0 sm:$0xff]  ;;  %p660_p11 = scmp.ne.s32.totalorder %s498_s9, %s659_s17  ;;  %p667_p1 = scmp.lt.s32.totalorder %s665_s28, %s659_s17 }
  0x1b   : > { %593 = vmatpush3.msra.mxu0 %v275_v7  ;;  %603 = vmatprep.subr.mxu1 %v721_v1  ;;  %v566_v34 = vld [vmem:[%s910_s5] ss:$0 sm:$0xff] }
  0x1c   : > { %595 = vmatmul.mubr.msk.f32.vlgmr.msra.gmra.mxu0 %vm286_vm1, %v274_v8  ;;  %604 = vmatpush3.msra.mxu1 %v365_v9  ;;  %v567_v38 = vld [vmem:[%s911_s6] ss:$0 sm:$0xff]  ;;  %p661_p12 = pnand %p660_p11, %p802_p5  ;;  %p668_p2 = por %p667_p1, %p666_p0 }
  0x1d   : > { %605 = vmatprep.subr.mxu1 %v721_v1  ;;  %613 = vmatprep.mubr.msk.f32.mxu1 %vm722_vm0, %v721_v1 }
  0x1e   : > { %606 = vmatpush3.msra.mxu1 %v364_v10  ;;  %p662_p13 = pneg %p661_p12 }
  0x1f   : > { %607 = vmatprep.subr.mxu1 %v721_v1 }
  0x20   : > { %608 = vmatpush3.msra.mxu1 %v363_v11  ;;  %p669_p3 = pnand %p668_p2, %p662_p13 }
  0x21   : > { %609 = vmatprep.subr.mxu1 %v721_v1 }
  0x22   : > { %610 = vmatpush3.msra.mxu1 %v362_v12 }
  0x23   : > { %611 = vmatprep.subr.mxu1 %v721_v1 }
  0x24   : > { %612 = vmatpush3.msra.mxu1 %v361_v13 }
  0xdc   : > { %v356_v15 = vpop.f32.mrf.mxu0 }
  0xdd   : > { %v357_v16 = vadd.f32 %v562_v14, %v356_v15 }
  0xde   : > { %v596_v17 = vpop.f32.mrf.mxu0 }
  0xdf   : > { %v360_v18 = vmax.f32 %v357_v16, 0.0 }
  0xe1   : > { %614 = vmatmul.mubr.msk.f32.vlgmr.msra.gmra.mxu1 %vm376_vm2, %v360_v18 }
 0x1a1   : > { %v446_v20 = vpop.f32.mrf.mxu1 }
 0x1a2   : > { %v447_v21 = vadd.f32 %v564_v19, %v446_v20 }
 0x1a3   : > { %v615_v22 = vpop.f32.mrf.mxu1 }
 0x1a4   : > { %v452_v23 = vadd.f32 %v447_v21, %v274_v8 }
 0x1a6   : > { %v453_v24 = vsel %vm286_vm1, %v452_v23, 0.0  ;;  %v457_v25 = vmul.f32 %v452_v23, %v452_v23 }
 0x1a7   : > { %454 = vadd.xlane.f32.xlu0 %v453_v24 }
 0x1a8   : > { %v458_v26 = vsel %vm286_vm1, %v457_v25, 0.0 }
 0x1ab   : > { %459 = vadd.xlane.f32.xlu0 %v458_v26 }
 0x230   : > { %v455_v27 = vpop.xlane.xlu0 %454 }
 0x231   : > { %v456_v28 = vmul.f32 0.03125, %v455_v27 }
 0x233   : > { %v462_v30 = vmul.f32 %v456_v28, %v456_v28  ;;  %v466_v36 = vsub.f32 %v452_v23, %v456_v28 }
 0x234   : > { %v460_v29 = vpop.xlane.xlu0 %459 }
 0x235   : > { %v461_v31 = vmul.f32 0.03125, %v460_v29 }
 0x237   : > { %v463_v32 = vsub.f32 %v461_v31, %v462_v30 }
 0x239   : > { %v464_v33 = vadd.f32 1e-05, %v463_v32 }
 0x23b   : > { %657 = vrsqrt.f32 %v464_v33 }
 0x248   : > { %v658_v35 = vpop.eup %657 }
 0x249   : > { %v473_v37 = vmul.f32 %v658_v35, %v566_v34 }
 0x24b   : > { %v474_v39 = vmul.f32 %v473_v37, %v466_v36 }
 0x24d   : > { %v481_v40 = vadd.f32 %v567_v38, %v474_v39 }
 0x24f   : > { %482 = vst.msk [vmem:[%s269_s8] sm:$0xff] %vm286_vm1, %v481_v40 }
 0x250   : > { %672 = shalt.err (!%p669_p3)
}
 0x251   : > { %s673_s19 = scalar_lea.hbm %s495_s15, 128  ;;  %s677_s23 = scalar_lea.hbm %s912_s7, 256 }
 0x252   : > { %p674_p4 = scmp.ne.s32.totalorder %s495_s15, %s673_s19  ;;  %p678_p9 = scmp.lt.s32.totalorder %s495_s15, %s912_s7 }
 0x253   : > { %p679_p10 = scmp.lt.s32.totalorder %s677_s23, %s673_s19 }
 0x254   : > { %p675_p7 = pnand %p674_p4, %p802_p5 }
 0x255   : > { %p680_p11 = por %p679_p10, %p678_p9 }
 0x256   : > { %p676_p8 = pneg %p675_p7 }
 0x258   : > { %p681_p12 = pnand %p680_p11, %p676_p8 }
 0x25a   : > { %684 = shalt.err (!%p681_p12)
}
 0x25b   : > { %616 = dma.vmem_to_hbm [thread:$0]  (%p802_p5), %s498_s9, 128, %s495_s15, %s484_s16  }
 0x25c PF: > { %p622_p13 = scmp.ge.s32.totalorder %s719_s27, 2  ;;  %s509_s13 = sand.u32 1, %s707_s24  }
 0x25d   : > { %s510_s14 = scalar_lea.sflag [#allocation3], %s509_s13 }
 0x25e   : > { %p619_p0 = pnand %p622_p13, %p806_p6 }
 0x260   : > { %p620_p1 = pneg %p619_p0 }
 0x262   : > { %702 = dma.done.wait (%p620_p1), %s510_s14, 128  }
 0x263   : > { %704 = vsyncadd (%p620_p1), %s510_s14, 4294967168  ;;  %p17_p2 = scmp.ge.s32.totalorder %s789_s30, 4   ;;  %s915_s24 = smov %s711_s25 }
 0x264   : > { %s916_s25 = smov %s715_s26  ;;  %s917_s26 = smov %s800_s10 }
 0x265   : > { %s918_s27 = smov %s789_s30  ;;  %19 = sbr.rel (!%p17_p2) target bundleno = 3 (0x3), region = 83 }
 0x26a   :  { %515 = vsyncpa [#allocation3], 1 }
 0x26b   :  { %517 = vsyncpa [#allocation3 + $0x1], 1 }

</bundles_post_ra>
